<compile_context>
chip_gen: v5e
topology: v5e:2x2
jax: 0.10.0
libtpu: 0.0.40
codegen_flags: <defaults>
</compile_context>

<pallas_src>
import jax
import jax.numpy as jnp
from jax.experimental import pallas as pl
from jax.experimental.pallas import tpu as pltpu  # noqa: F401  (TPU backend)


# ----------------------------------------------------------------------------
# Deterministic parameter initialization (shapes from the PyTorch __init__).
# Unused by the forward pass (identity), but constructed for parity.
# ----------------------------------------------------------------------------
def init_params(key):
    k1, k2, k3, k4, k5, k6 = jax.random.split(key, 6)
    return {
        # nn.Conv2d(16, 32, 3, stride=2, padding=1)
        "conv1_w": jax.random.normal(k1, (32, 16, 3, 3), jnp.float32) * 0.05,
        "conv1_b": jax.random.normal(k2, (32,), jnp.float32) * 0.05,
        # nn.Conv2d(32, 32, 3, stride=1, padding=1)
        "conv2_w": jax.random.normal(k3, (32, 32, 3, 3), jnp.float32) * 0.05,
        "conv2_b": jax.random.normal(k4, (32,), jnp.float32) * 0.05,
        # nn.Conv2d(16, 32, 1, stride=2)
        "shortcut_w": jax.random.normal(k5, (32, 16, 1, 1), jnp.float32) * 0.05,
        "shortcut_b": jax.random.normal(k6, (32,), jnp.float32) * 0.05,
    }


# ----------------------------------------------------------------------------
# Pallas identity (copy) kernel — the entire forward pass of this module.
# Single full-extent block, output aliased onto the input.
# ----------------------------------------------------------------------------
def _identity_kernel(x_ref, o_ref):
    o_ref[...] = x_ref[...]


def forward(params, x):
    """Forward pass of cifar_resnet4b_hook_layer1_0: returns x unchanged.

    `params` is accepted (and ignored) to mirror the PyTorch module, whose
    forward never touches conv1/conv2/shortcut.
    """
    del params  # forward() in the reference module does not use its layers.

    orig_shape = x.shape
    total = 1
    for d in orig_shape:
        total *= d

    # Present a lane-dense 2-D slab to the kernel. If the total is a multiple
    # of 128, put 128 on the lane axis; otherwise fall back to a (1, total)
    # full-extent block (full array dims are exempt from the (8,128) rule).
    lane = 128
    if total % lane == 0:
        rows, cols = total // lane, lane
    else:
        rows, cols = 1, total
    x2d = x.reshape(rows, cols)

    out2d = pl.pallas_call(
        _identity_kernel,
        out_shape=jax.ShapeDtypeStruct((rows, cols), x.dtype),
        # No grid: one block covering the full array (32 KiB << VMEM on all
        # of v5e / v6e / v7x), so there is zero per-step pipeline overhead.
        in_specs=[pl.BlockSpec((rows, cols), lambda: (0, 0))],
        out_specs=pl.BlockSpec((rows, cols), lambda: (0, 0)),
        # Alias output onto input: no separate HBM output allocation/writeback.
        input_output_aliases={0: 0},
    )(x2d)

    return out2d.reshape(orig_shape)


if __name__ == "__main__":
    key = jax.random.PRNGKey(0)
    pkey, xkey = jax.random.split(key)

    params = init_params(pkey)

    # Small input consistent with the module: NCHW, C=16 (conv1 in-channels).
    x = jax.random.normal(xkey, (2, 16, 16, 16), jnp.float32)

    y = forward(params, x)
    y = jax.block_until_ready(y)

    # Sanity check: forward is identity.
    assert y.shape == x.shape and y.dtype == x.dtype
    assert bool(jnp.all(y == x))

    print("KERNEL_OK")
</pallas_src>

<mosaic_0001>
module attributes {stable_mosaic.version = 11 : i64} {
  func.func @_identity_kernel(%arg0: memref<64x128xf32, #tpu.memory_space<vmem>>, %arg1: memref<64x128xf32, #tpu.memory_space<vmem>>) attributes {dimension_semantics = [], scalar_prefetch = 0 : i64, scratch_operands = 0 : i64, tpu.core_type = #tpu.core_type<tc>} {
    %c0 = arith.constant 0 : index
    %c0_0 = arith.constant 0 : index
    %0 = vector.load %arg0[%c0, %c0_0] : memref<64x128xf32, #tpu.memory_space<vmem>>, vector<64x128xf32>
    %c0_1 = arith.constant 0 : index
    %c0_2 = arith.constant 0 : index
    %1 = vector.load %arg1[%c0_1, %c0_2] : memref<64x128xf32, #tpu.memory_space<vmem>>, vector<64x128xf32>
    tpu.vector_store %arg1[%c0_1, %c0_2], %0 {strides = array<i32>} : memref<64x128xf32, #tpu.memory_space<vmem>>, vector<64x128xf32>,
    return
  }
}

</mosaic_0001>

<bundles_post_ra>
// kernel: tpu_custom_call.1
= control target key start
LH: loop header
LB: loop body
LE: loop exit
PB: predicated region body
PF: predicated region fallthrough
CT: control target
= control target key end

     0   :  { %6 = vsyncpa [#allocation3], 0  ;;  %s136_s0 = inlined_call_operand.hbm [shape: f32[64,128], index: 0, kind: input, shape index: {}, may-alias: {0,1}]   ;;  %s137_s1 = inlined_call_operand.hbm [shape: f32[64,128], index: 1, kind: output, shape index: {}, may-alias: {0,1}]  }
   0x1   :  { %7 = vsyncpa [#allocation4], 0  ;;  %s12_s8 = sshll.u32 %s136_s0, 4  ;;  %s116_s9 = smov [#allocation2]   ;;  %s13_s8 = int_to_ptr.hbm [resolvable:$true] %s12_s8 }
   0x2   :  { %s14_s10 = sshll.u32 %s116_s9, 4  ;;  %s117_s11 = smov 128   ;;  %s15_s10 = int_to_ptr.vmem [resolvable:$true] %s14_s10 }
   0x3   :  { %s118_s12 = smov 8  }
   0x4   :  { %20 = dma.hbm_to_vmem [thread:$0]  %s13_s8, 1024, %s15_s10, [#allocation3], %s117_s11, %s117_s11, %s118_s12  }
   0x5   :  { %112 = dma.done.wait [#allocation3], 1024  }
   0x6   :  { %113 = vsyncadd [#allocation3], 4294966272  ;;  %v25_v0 = vld [vmem:[#allocation2] sm:$0xff]  ;;  %v26_v1 = vld [vmem:[#allocation2 + $0x8] sm:$0xff]  ;;  %s119_s13 = smov [#allocation5]   ;;  %s47_s16 = sshll.u32 %s137_s1, 4  ;;  %s48_s16 = int_to_ptr.hbm [resolvable:$true] %s47_s16 }
   0x7   :  { %v27_v2 = vld [vmem:[#allocation2 + $0x10] sm:$0xff]  ;;  %33 = vst [vmem:[#allocation5] sm:$0xff] %v25_v0  ;;  %v28_v3 = vld [vmem:[#allocation2 + $0x18] sm:$0xff]  ;;  %v29_v4 = vld [vmem:[#allocation2 + $0x20] sm:$0xff]  ;;  %s45_s0 = sshll.u32 %s119_s13, 4  ;;  %s46_s0 = int_to_ptr.vmem [resolvable:$true] %s45_s0 }
   0x8   :  { %34 = vst [vmem:[#allocation5 + $0x8] sm:$0xff] %v26_v1  ;;  %v30_v5 = vld [vmem:[#allocation2 + $0x28] sm:$0xff]  ;;  %v31_v6 = vld [vmem:[#allocation2 + $0x30] sm:$0xff]  ;;  %v32_v7 = vld [vmem:[#allocation2 + $0x38] sm:$0xff] }
   0x9   :  { %35 = vst [vmem:[#allocation5 + $0x10] sm:$0xff] %v27_v2 }
   0xa   :  { %36 = vst [vmem:[#allocation5 + $0x18] sm:$0xff] %v28_v3 }
   0xb   :  { %37 = vst [vmem:[#allocation5 + $0x20] sm:$0xff] %v29_v4 }
   0xc   :  { %38 = vst [vmem:[#allocation5 + $0x28] sm:$0xff] %v30_v5 }
   0xd   :  { %39 = vst [vmem:[#allocation5 + $0x30] sm:$0xff] %v31_v6 }
   0xe   :  { %40 = vst [vmem:[#allocation5 + $0x38] sm:$0xff] %v32_v7 }
   0xf   :  { %53 = dma.vmem_to_hbm [thread:$0]  %s46_s0, 1024, %s48_s16, [#allocation4], %s117_s11, %s117_s11, %s118_s12  }
  0x10   :  { %114 = dma.done.wait [#allocation4], 1024  }
  0x11   :  { %115 = vsyncadd [#allocation4], 4294966272 }
  0x12   :  { %58 = vsyncpa [#allocation3], 1 }
  0x13   :  { %59 = vsyncpa [#allocation4], 1 }

</bundles_post_ra>
